<compile_context>
chip_gen: v7x
topology: tpu7x:2x2x1
jax: 0.10.0
libtpu: 0.0.40
codegen_flags: <defaults>
</compile_context>

<pallas_src>
import functools

import jax
import jax.numpy as jnp
from jax.experimental import pallas as pl
from jax.experimental.pallas import tpu as pltpu

ALPHA = 1.0
GAMMA = 2.0

_TARGET_BLOCK_BYTES = 4 << 20   # ~4 MiB logits block per grid step
_MAX_TILE_N = 4096              # keep per-step latency reasonable
_VMEM_LIMIT_BYTES = 32 << 20    # <= physical on every generation (v7x: 64 MiB)


def focal_loss_kernel(logits_ref, targets_ref, out_ref, *,
                      alpha, gamma, n_rows, tile_n, mask_tail):
    x = logits_ref[...].astype(jnp.float32)          # (tile_n, C)
    t = targets_ref[...]                             # (tile_n, 1) int32

    # Numerically stable log-softmax (per row).
    m = jnp.max(x, axis=-1, keepdims=True)           # (tile_n, 1)
    z = x - m
    sum_exp = jnp.sum(jnp.exp(z), axis=-1, keepdims=True)
    lse = jnp.log(sum_exp) + m

    # Gather the target-class logit via a masked select (no dynamic gather on TPU).
    col = jax.lax.broadcasted_iota(jnp.int32, x.shape, 1)       # (tile_n, C)
    x_t = jnp.sum(jnp.where(col == t, x, 0.0), axis=-1, keepdims=True)

    ce = lse - x_t                                   # cross-entropy per sample
    pt = jnp.exp(-ce)                                # per-row only (cheap)
    one_minus_pt = 1.0 - pt

    # Integer-gamma specialization: VALU multiplies instead of a float pow
    # (which would burn two extra EUP transcendentals per row).
    g = float(gamma)
    if g == int(g) and 0 <= int(g) <= 4:
        w = jnp.ones_like(one_minus_pt)
        for _ in range(int(g)):
            w = w * one_minus_pt
    else:
        w = one_minus_pt ** g

    focal = alpha * w * ce                           # (tile_n, 1)

    if mask_tail:
        # Zero padded rows of the last tile (select, so NaN/garbage-safe).
        # Free VALU filler while the kernel is HBM/EUP bound.
        row_ids = pl.program_id(0) * tile_n + jax.lax.broadcasted_iota(
            jnp.int32, (tile_n, 1), 0)
        focal = jnp.where(row_ids < n_rows, focal, 0.0)

    partial = jnp.sum(focal)                         # scalar partial sum
    # Lane-dense write: splat the partial across the (1, 128) output block.
    out_ref[...] = jnp.broadcast_to(partial, out_ref.shape).astype(jnp.float32)


def _choose_tile_n(n, c, itemsize):
    """Byte-based tile sizing: ~_TARGET_BLOCK_BYTES per logits block."""
    if n <= 8:
        return n                                     # block == full dim is always legal
    row_bytes = max(1, c * itemsize)
    tile = _TARGET_BLOCK_BYTES // row_bytes
    tile = int(max(8, min(tile, n, _MAX_TILE_N)))
    tile = (tile // 8) * 8                           # 8-aligned (sublane constraint)
    if n > 16 and tile >= n:
        # Keep >= 2 grid steps so v7x's two TensorCores can split the parallel
        # axis; harmless no-op on v5e/v6e (single TC).
        tile = max(8, (((n + 1) // 2) // 8) * 8)
    return tile


def focal_loss(logits, targets, alpha=ALPHA, gamma=GAMMA, tile_n=None,
               cast_logits_to=None):
    """logits: (N, C) float (f32/bf16), targets: (N,) int -> scalar f32 mean focal loss.

    tile_n (optional): batch tile size; must be a multiple of 8 or equal to N.
    cast_logits_to (optional): e.g. jnp.bfloat16 to halve the HBM stream; the
      kernel always computes in f32 internally.
    """
    # TODO(synk): reduction='sum'/'none' variants of the module are not implemented;
    # this matches the module default reduction='mean'.
    if cast_logits_to is not None:
        logits = logits.astype(cast_logits_to)

    n, c = logits.shape
    targets2d = targets.reshape(n, 1).astype(jnp.int32)
    itemsize = jnp.dtype(logits.dtype).itemsize

    if tile_n is None:
        tile_n = _choose_tile_n(n, c, itemsize)
    if tile_n != n and tile_n % 8 != 0:
        raise ValueError(f"tile_n={tile_n} must be a multiple of 8 or equal to N={n}")

    # TODO(synk): for extreme C (block > ~16 MiB even at tile_n=8, i.e. C in the
    # millions) a C-tiled online-softmax accumulator variant would be needed.

    num_tiles = pl.cdiv(n, tile_n)
    mask_tail = (n % tile_n) != 0

    kernel = functools.partial(
        focal_loss_kernel,
        alpha=float(alpha), gamma=float(gamma),
        n_rows=n, tile_n=tile_n, mask_tail=mask_tail,
    )

    out = pl.pallas_call(
        kernel,
        out_shape=jax.ShapeDtypeStruct((1, num_tiles * 128), jnp.float32),
        grid=(num_tiles,),
        in_specs=[
            pl.BlockSpec((tile_n, c), lambda i: (i, 0)),
            pl.BlockSpec((tile_n, 1), lambda i: (i, 0)),
        ],
        # One lane-dense (1, 128) partial-sum block per grid step.
        out_specs=pl.BlockSpec((1, 128), lambda i: (0, i)),
        compiler_params=pltpu.CompilerParams(
            dimension_semantics=("parallel",),       # independent tiles -> megacore-shardable
            vmem_limit_bytes=_VMEM_LIMIT_BYTES,
        ),
    )(logits, targets2d)

    # Each block holds its tile's partial splatted across 128 lanes -> one dense reduce.
    return jnp.sum(out) / (128.0 * n)


def focal_loss_ref(logits, targets, alpha=ALPHA, gamma=GAMMA):
    """Pure-JAX reference matching torch F.cross_entropy + focal weighting (mean)."""
    logp = jax.nn.log_softmax(logits.astype(jnp.float32), axis=-1)
    ce = -jnp.take_along_axis(logp, targets[:, None], axis=-1)[:, 0]
    pt = jnp.exp(-ce)
    return jnp.mean(alpha * (1.0 - pt) ** gamma * ce)


if __name__ == "__main__":
    key = jax.random.PRNGKey(0)
    k1, k2, k3, k4, k5, k6 = jax.random.split(key, 6)

    # Primary small test: batch of 8 samples, 32 classes (auto tile, single block).
    N, C = 8, 32
    logits = jax.random.normal(k1, (N, C), dtype=jnp.float32)
    targets = jax.random.randint(k2, (N,), 0, C, dtype=jnp.int32)

    loss = focal_loss(logits, targets)
    jax.block_until_ready(loss)
    ref = focal_loss_ref(logits, targets)
    assert jnp.allclose(loss, ref, rtol=1e-5, atol=1e-5), (loss, ref)

    # Multi-tile grid + tail-row masking path (explicit tile_n).
    N2, C2 = 20, 32
    logits2 = jax.random.normal(k3, (N2, C2), dtype=jnp.float32)
    targets2 = jax.random.randint(k4, (N2,), 0, C2, dtype=jnp.int32)

    loss2 = focal_loss(logits2, targets2, tile_n=8)
    jax.block_until_ready(loss2)
    ref2 = focal_loss_ref(logits2, targets2)
    assert jnp.allclose(loss2, ref2, rtol=1e-5, atol=1e-5), (loss2, ref2)

    # Auto byte-based tile selection on a mid-sized batch (>= 2 grid steps).
    N3, C3 = 40, 32
    logits3 = jax.random.normal(k5, (N3, C3), dtype=jnp.float32)
    targets3 = jax.random.randint(k6, (N3,), 0, C3, dtype=jnp.int32)

    loss3 = focal_loss(logits3, targets3)
    jax.block_until_ready(loss3)
    ref3 = focal_loss_ref(logits3, targets3)
    assert jnp.allclose(loss3, ref3, rtol=1e-5, atol=1e-5), (loss3, ref3)

    # bf16 streaming path (kernel and reference both see the same bf16 values).
    logits_bf16 = logits.astype(jnp.bfloat16)
    loss4 = focal_loss(logits_bf16, targets)
    jax.block_until_ready(loss4)
    ref4 = focal_loss_ref(logits_bf16, targets)
    assert jnp.allclose(loss4, ref4, rtol=1e-4, atol=1e-4), (loss4, ref4)

    print("KERNEL_OK")
</pallas_src>

<mosaic_0001>
module attributes {stable_mosaic.version = 11 : i64} {
  func.func @focal_loss_kernel(%arg0: i32, %arg1: memref<8x32xf32, #tpu.memory_space<vmem>>, %arg2: memref<8x1xi32, #tpu.memory_space<vmem>>, %arg3: memref<1x128xf32, #tpu.memory_space<vmem>>) attributes {dimension_semantics = [#tpu.dimension_semantics<parallel>], iteration_bounds = array<i64: 1>, scalar_prefetch = 0 : i64, scratch_operands = 0 : i64, tpu.core_type = #tpu.core_type<tc>, window_params = [{transform_indices = @transform_0, window_bounds = array<i64: 8, 32>}, {transform_indices = @transform_1, window_bounds = array<i64: 8, 1>}, {transform_indices = @transform_2, window_bounds = array<i64: 1, 128>}]} {
    %c0 = arith.constant 0 : index
    %c0_0 = arith.constant 0 : index
    %0 = vector.load %arg1[%c0, %c0_0] : memref<8x32xf32, #tpu.memory_space<vmem>>, vector<8x32xf32>
    %c0_1 = arith.constant 0 : index
    %c0_2 = arith.constant 0 : index
    %1 = vector.load %arg2[%c0_1, %c0_2] : memref<8x1xi32, #tpu.memory_space<vmem>>, vector<8x1xi32>
    %cst = arith.constant dense<0xFF800000> : vector<8xf32>
    %2 = vector.multi_reduction <maximumf>, %0, %cst [1] : vector<8x32xf32> to vector<8xf32>
    %3 = vector.shape_cast %2 : vector<8xf32> to vector<8x1xf32>
    %4 = vector.broadcast %3 : vector<8x1xf32> to vector<8x32xf32>
    %5 = arith.subf %0, %4 : vector<8x32xf32>
    %6 = math.exp %5 : vector<8x32xf32>
    %cst_3 = arith.constant dense<0.000000e+00> : vector<8xf32>
    %7 = vector.multi_reduction <add>, %6, %cst_3 [1] : vector<8x32xf32> to vector<8xf32>
    %8 = vector.shape_cast %7 : vector<8xf32> to vector<8x1xf32>
    %9 = math.log %8 : vector<8x1xf32>
    %10 = arith.addf %9, %3 : vector<8x1xf32>
    %11 = tpu.iota {dimensions = array<i32: 1>} : vector<8x32xi32>
    %12 = vector.broadcast %1 : vector<8x1xi32> to vector<8x32xi32>
    %13 = arith.cmpi eq, %11, %12 : vector<8x32xi32>
    %cst_4 = arith.constant 0.000000e+00 : f32
    %14 = vector.broadcast %cst_4 : f32 to vector<8x32xf32>
    %15 = arith.select %13, %0, %14 : vector<8x32xi1>, vector<8x32xf32>
    %cst_5 = arith.constant dense<0.000000e+00> : vector<8xf32>
    %16 = vector.multi_reduction <add>, %15, %cst_5 [1] : vector<8x32xf32> to vector<8xf32>
    %17 = vector.shape_cast %16 : vector<8xf32> to vector<8x1xf32>
    %18 = arith.subf %10, %17 : vector<8x1xf32>
    %cst_6 = arith.constant 0.000000e+00 : f32
    %19 = vector.broadcast %cst_6 : f32 to vector<8x1xf32>
    %20 = arith.subf %19, %18 : vector<8x1xf32>
    %21 = math.exp %20 : vector<8x1xf32>
    %cst_7 = arith.constant 1.000000e+00 : f32
    %22 = vector.broadcast %cst_7 : f32 to vector<8x1xf32>
    %23 = arith.subf %22, %21 : vector<8x1xf32>
    %cst_8 = arith.constant 1.000000e+00 : f32
    %24 = vector.broadcast %cst_8 : f32 to vector<8x1xf32>
    %25 = arith.mulf %24, %23 : vector<8x1xf32>
    %26 = arith.mulf %25, %23 : vector<8x1xf32>
    %cst_9 = arith.constant 1.000000e+00 : f32
    %27 = vector.broadcast %cst_9 : f32 to vector<8x1xf32>
    %28 = arith.mulf %27, %26 : vector<8x1xf32>
    %29 = arith.mulf %28, %18 : vector<8x1xf32>
    %30 = vector.shape_cast %29 : vector<8x1xf32> to vector<1x8x1xf32>
    %cst_10 = arith.constant dense<0.000000e+00> : vector<1xf32>
    %31 = vector.multi_reduction <add>, %30, %cst_10 [1, 2] : vector<1x8x1xf32> to vector<1xf32>
    %32 = vector.shape_cast %31 : vector<1xf32> to vector<1x1x1xf32>
    %33 = vector.extract %32[0, 0, 0] : f32 from vector<1x1x1xf32>
    %34 = vector.broadcast %33 : f32 to vector<1x128xf32>
    %c0_11 = arith.constant 0 : index
    %c0_12 = arith.constant 0 : index
    %35 = vector.load %arg3[%c0_11, %c0_12] : memref<1x128xf32, #tpu.memory_space<vmem>>, vector<1x128xf32>
    tpu.vector_store %arg3[%c0_11, %c0_12], %34 {strides = array<i32>} : memref<1x128xf32, #tpu.memory_space<vmem>>, vector<1x128xf32>,
    return
  }
  func.func @transform_0(%arg0: i32) -> (i32, i32) {
    %c0_i32 = arith.constant 0 : i32
    %c0_i32_0 = arith.constant 0 : i32
    return %arg0, %c0_i32 : i32, i32
  }
  func.func @transform_1(%arg0: i32) -> (i32, i32) {
    %c0_i32 = arith.constant 0 : i32
    %c0_i32_0 = arith.constant 0 : i32
    return %arg0, %c0_i32 : i32, i32
  }
  func.func @transform_2(%arg0: i32) -> (i32, i32) {
    %c0_i32 = arith.constant 0 : i32
    %c0_i32_0 = arith.constant 0 : i32
    return %c0_i32, %arg0 : i32, i32
  }
}

</mosaic_0001>

<bundles_post_ra>
// kernel: tpu_custom_call.1
= control target key start
LH: loop header
LB: loop body
LE: loop exit
PB: predicated region body
PF: predicated region fallthrough
CT: control target
= control target key end

     0   :  { %vm14_vm0 = vcmask 261120   ;;  %s144_s0 = inlined_call_operand.vmem [shape: f32[8,32], index: 0, kind: input, shape index: {}]   ;;  %s145_s1 = inlined_call_operand.vmem [shape: s32[8,1], index: 1, kind: input, shape index: {}]   ;;  %s146_s2 = inlined_call_operand.hbm [shape: f32[1,128], index: 2, kind: output, shape index: {}]  }
   0x1   :  { %v12_v0 = vld [vmem:[%s144_s0] sm:$0xff] }
   0x2   :  { %7 = vsyncpa [#allocation3], 0  ;;  %v15_v1 = vsel %vm14_vm0, %v12_v0, -inf  ;;  %v106_v2 = vmov 0   ;;  %v13_v3 = vld [vmem:[%s145_s1] sm:$0xff]  ;;  %v27_v7 = vlaneseq  ;;  %vm44_vm2 = vcmask 7168  }
   0x3   :  { %75 = vset.pattern.permute.xlu0 %v106_v2  ;;  %s107_s0 = smov [#allocation2]  }
   0x4   :  { %16 = vmax.xlane.f32.xlu0 %v15_v1  ;;  %v28_v8 = vand.u32 127, %v27_v7  ;;  %s63_s1 = sshll.u32 %s107_s0, 4  ;;  %s64_s1 = int_to_ptr.vmem [resolvable:$true] %s63_s1 }
   0x5   :  { %s82_s14 = scalar_lea.vmem %s64_s1, 16  ;;  %s86_s15 = scalar_lea.vmem %s64_s1, 32 }
   0x6   :  { %p83_p0 = scmp.ne.s32.totalorder %s64_s1, %s82_s14  ;;  %p87_p1 = scmp.lt.s32.totalorder %s64_s1, %s64_s1 }
   0x7   :  { %p88_p2 = scmp.lt.s32.totalorder %s86_s15, %s82_s14 }
   0x9   :  { %p89_p3 = por %p88_p2, %p87_p1 }
   0xb   :  { %p90_p4 = pnand %p89_p3, %p83_p0 }
  0x1a   :  { %30 = vperm.xlu0 %75, %v13_v3  }
  0x91   :  { %v17_v4 = vpop.xlane.xlu0 %16 }
  0x92   :  { %v18_v5 = vsub.f32 %v12_v0, %v17_v4 }
  0x94   :  { %v19_v6 = vmul.f32 1.442695, %v18_v5 }
  0x96   :  { %76 = vpow2.f32 %v19_v6 }
  0x99   :  { %v31_v9 = vpop.permute.xlu0 %30 }
  0x9a   :  { %vm32_vm1 = vcmp.eq.s32.totalorder %v28_v8, %v31_v9 }
  0x9b   :  { %v33_v11 = vsel %vm32_vm1, %v12_v0, 0.0 }
  0x9c   :  { %v34_v13 = vsel %vm14_vm0, %v33_v11, 0.0 }
  0xa0   :  { %v77_v10 = vpop.eup %76 }
  0xa1   :  { %v21_v12 = vsel %vm14_vm0, %v77_v10, 0.0 }
  0xa2   :  { %22 = vadd.xlane.f32.xlu1 %v21_v12 }
  0xa6   :  { %35 = vadd.xlane.f32.xlu1 %v34_v13 }
 0x12f   :  { %v23_v14 = vpop.xlane.xlu1 %22 }
 0x130   :  { %78 = vlog2.f32 %v23_v14 }
 0x133   :  { %v36_v17 = vpop.xlane.xlu1 %35 }
 0x13a   :  { %v79_v15 = vpop.eup %78 }
 0x13b   :  { %v25_v16 = vmul.f32 0.6931472, %v79_v15 }
 0x13d   :  { %v26_v18 = vadd.f32 %v25_v16, %v17_v4 }
 0x13f   :  { %v37_v19 = vsub.f32 %v26_v18, %v36_v17 }
 0x141   :  { %v38_v20 = vsub.f32 0.0, %v37_v19 }
 0x143   :  { %v39_v21 = vmul.f32 1.442695, %v38_v20 }
 0x145   :  { %80 = vpow2.f32 %v39_v21 }
 0x14f   :  { %v81_v22 = vpop.eup %80 }
 0x150   :  { %v41_v23 = vsub.f32 1.0, %v81_v22 }
 0x152   :  { %v42_v24 = vmul.f32 %v41_v23, %v41_v23 }
 0x154   :  { %v43_v25 = vmul.f32 %v42_v24, %v37_v19 }
 0x156   :  { %v45_v26 = vsel %vm44_vm2, %v43_v25, 0.0 }
 0x157   :  { %46 = vadd.xlane.f32.xlu1 %v45_v26 }
 0x1e4   :  { %v47_v27 = vpop.xlane.xlu1 %46 }
 0x1e5   :  { %v48_v28 = vrot.slane %v47_v27, 4 }
 0x1e7   :  { %v49_v29 = vadd.f32 %v48_v28, %v47_v27 }
 0x1e9   :  { %v50_v30 = vrot.slane %v49_v29, 2 }
 0x1eb   :  { %v51_v31 = vadd.f32 %v50_v30, %v49_v29 }
 0x1ed   :  { %v52_v32 = vrot.slane %v51_v31, 1 }
 0x1ef   :  { %v53_v33 = vadd.f32 %v52_v32, %v51_v31 }
 0x1f1   :  { %71 = vpush %v53_v33 }
 0x222   :  { %s72_s13 = spop %71 }
 0x223   :  { %v55_v34 = vstv %s72_s13 }
 0x224   :  { %56 = vst [vmem:[#allocation2] sm:$0x1] %v55_v34 }
 0x225   :  { %93 = shalt.err (!%p90_p4)
}
 0x226   :  { %s94_s18 = scalar_lea.hbm %s146_s2, 16 }
 0x227   :  { %p95_p5 = scmp.ne.s32.totalorder %s146_s2, %s94_s18  ;;  %p98_p6 = scmp.lt.u32.totalorder %s94_s18, %s146_s2 }
 0x229   :  { %p100_p7 = pnand %p98_p6, %p95_p5 }
 0x22b   :  { %103 = shalt.err (!%p100_p7)
}
 0x22c   :  { %66 = dma.vmem_to_hbm [thread:$0]  %s64_s1, 16, %s146_s2, [#allocation3]  }
 0x22d   :  { %104 = dma.done.wait [#allocation3], 16  }
 0x22e   :  { %105 = vsyncadd [#allocation3], 4294967280 }
 0x22f   :  { %70 = vsyncpa [#allocation3], 1 }

</bundles_post_ra>
